<compile_context>
chip_gen: v5e
topology: v5e:2x2
jax: 0.10.0
libtpu: 0.0.40
codegen_flags: <defaults>
</compile_context>

<pallas_src>
import functools

import jax
import jax.numpy as jnp
from jax.experimental import pallas as pl
from jax.experimental.pallas import tpu as pltpu

_EPS = 1e-12  # F.normalize default eps


def _round_up(v, m):
    return ((v + m - 1) // m) * m


def _pick_tm(b, pref=256):
    """Batch tile <= pref that minimizes padding (multiple of 8)."""
    k = max(1, -(-b // pref))           # number of batch tiles
    return _round_up(-(-b // k), 8)     # ceil(b/k) rounded up to 8


def _vmem_info():
    try:
        cap = int(pltpu.get_tpu_info().vmem_capacity_bytes)
    except Exception:
        cap = 64 * 1024 * 1024          # conservative fallback
    limit = min(cap // 2, 64 * 1024 * 1024)
    return cap, limit


# --------------------------------------------------------------------------------------
# Kernels
# --------------------------------------------------------------------------------------
def _cosine_linear_kernel(x_ref, wt_ref, scale_ref, out_ref):
    """x: (TM, D) compute dtype (raw), wt: (D, TN) compute dtype (pre-normalized columns),
    scale: (TM, 1) f32 = sigma / max(||x_row||, eps), out: (TM, TN)."""
    cos = jnp.dot(x_ref[...], wt_ref[...], preferred_element_type=jnp.float32)
    out_ref[...] = (scale_ref[...] * cos).astype(out_ref.dtype)


def _cosine_reduce_kernel(x_ref, wt_ref, xinv_ref, sigma_ref, out_ref, *,
                          nb_proxy, approx_recip):
    """Fused cosine-linear + reduce_proxies.

    x: (TM, D), wt: (P, D, TC) proxy-major pre-normalized, xinv: (TM, 1) f32,
    sigma: (1,) SMEM, out: (TM, TC) class logits.
    """
    x = x_ref[...]
    xinv = xinv_ref[...]

    # One MXU matmul per proxy; each proxy is a contiguous (TM, TC) tile -> pure VPU softmax.
    cos = []
    for p in range(nb_proxy):
        c = jnp.dot(x, wt_ref[p], preferred_element_type=jnp.float32)
        cos.append(c * xinv)

    # softmax over the proxy axis (unrolled over small static P), then weighted sum.
    m = cos[0]
    for c in cos[1:]:
        m = jnp.maximum(m, c)
    exps = [jnp.exp(c - m) for c in cos]
    denom = exps[0]
    for e in exps[1:]:
        denom = denom + e
    num = exps[0] * cos[0]
    for e, c in zip(exps[1:], cos[1:]):
        num = num + e * c

    if approx_recip:
        red = num * pl.reciprocal(denom, approx=True)   # EUP slot, free in VPU-bound epilogue
    else:
        red = num / denom                               # exact path for f32 checks

    # sigma applied AFTER the proxy reduction (matches torch ordering exactly).
    out_ref[...] = (sigma_ref[0] * red).astype(out_ref.dtype)


# --------------------------------------------------------------------------------------
# Wrapper
# --------------------------------------------------------------------------------------
def cosine_linear_forward(x, weight, sigma=None, nb_proxy=1, to_reduce=False,
                          compute_dtype=jnp.bfloat16):
    """Pallas implementation of CosineLinear.forward.

    x:      (B, in_features)
    weight: (out_features * nb_proxy, in_features)   (torch Linear layout)
    sigma:  scalar or None
    compute_dtype: MXU operand dtype (bf16 recommended; f32 accumulation always).
    returns {'logits': (B, out_features*nb_proxy)}  or (B, out_features) if reduced.
    """
    B, D = x.shape
    O, Dw = weight.shape
    assert D == Dw, "feature-dim mismatch"
    out_dtype = x.dtype
    sigma_val = 1.0 if sigma is None else float(sigma)

    vmem_cap, vmem_limit = _vmem_info()
    tile_budget = int(vmem_limit * 0.75)
    csize = jnp.dtype(compute_dtype).itemsize
    osize = jnp.dtype(out_dtype).itemsize

    # ---- batch tiling (minimize padding) ----
    TM = _pick_tm(B)
    B_pad = _round_up(B, TM)

    # ---- one-time x prep: f32 inverse row-norms, compute-dtype stream ----
    xf = x.astype(jnp.float32)
    x_inv = 1.0 / jnp.maximum(jnp.sqrt(jnp.sum(xf * xf, axis=1, keepdims=True)), _EPS)
    x_c = x.astype(compute_dtype)
    if B_pad != B:
        x_c = jnp.pad(x_c, ((0, B_pad - B), (0, 0)))
        x_inv = jnp.pad(x_inv, ((0, B_pad - B), (0, 0)))   # zero rows -> zero outputs

    # ---- one-time weight prep: row-normalize in f32, cast to compute dtype ----
    wf = weight.astype(jnp.float32)
    w_inv = 1.0 / jnp.maximum(jnp.sqrt(jnp.sum(wf * wf, axis=1, keepdims=True)), _EPS)
    wn = (wf * w_inv).astype(compute_dtype)

    compiler_params = pltpu.CompilerParams(
        dimension_semantics=("parallel", "parallel"),
        vmem_limit_bytes=vmem_limit,
    )
    big_vmem = vmem_cap >= 96 * 1024 * 1024   # v5e / v6e (128 MiB); False on v7x (64 MiB)

    if to_reduce and nb_proxy > 1:
        assert O % nb_proxy == 0, "Shape error"
        C = O // nb_proxy

        tc_pref = 512 if (big_vmem and C >= 512) else 256
        TC = min(tc_pref, _round_up(C, 128))

        def est_reduce(tc):
            return (nb_proxy * tc * D * csize * 2      # double-buffered weight slabs
                    + TM * D * csize * 2               # double-buffered x
                    + TM * tc * osize * 2              # double-buffered out
                    + 2 * nb_proxy * TM * tc * 4)      # live f32 cos/exp tiles

        while TC > 128 and est_reduce(TC) > tile_budget:
            TC -= 128

        C_pad = _round_up(C, TC)
        grid_rows, grid_cols = B_pad // TM, C_pad // TC
        if grid_rows == 1 and grid_cols == 1 and TC % 256 == 0:   # feed both v7x TCs
            TC //= 2
            grid_cols = C_pad // TC

        # torch view(bs, C, P): weight row index = class*P + proxy. Re-lay out ONCE to
        # proxy-major, pre-transposed (P, D, C) so each proxy is a plain (TM,D)@(D,TC) dot.
        w3 = jnp.transpose(wn.reshape(C, nb_proxy, D), (1, 2, 0))   # (P, D, C)
        if C_pad != C:
            w3 = jnp.pad(w3, ((0, 0), (0, 0), (0, C_pad - C)))

        sigma_arr = jnp.full((1,), sigma_val, dtype=jnp.float32)

        # adaptive residency: keep resident whichever operand would be re-streamed the most.
        x_resident = grid_rows * nb_proxy * C_pad <= grid_cols * B_pad
        if x_resident:
            grid = (grid_rows, grid_cols)
            x_map = lambda i, j: (i, 0)
            s_map = lambda i, j: (i, 0)
            w_map = lambda i, j: (0, 0, j)
            o_map = lambda i, j: (i, j)
        else:
            grid = (grid_cols, grid_rows)
            x_map = lambda j, i: (i, 0)
            s_map = lambda j, i: (i, 0)
            w_map = lambda j, i: (0, 0, j)
            o_map = lambda j, i: (i, j)

        kernel = functools.partial(
            _cosine_reduce_kernel, nb_proxy=nb_proxy,
            approx_recip=(jnp.dtype(compute_dtype) != jnp.dtype(jnp.float32)))

        out = pl.pallas_call(
            kernel,
            out_shape=jax.ShapeDtypeStruct((B_pad, C_pad), out_dtype),
            grid=grid,
            in_specs=[
                pl.BlockSpec((TM, D), x_map),
                pl.BlockSpec((nb_proxy, D, TC), w_map),
                pl.BlockSpec((TM, 1), s_map),
                pl.BlockSpec(memory_space=pltpu.MemorySpace.SMEM),   # sigma scalar
            ],
            out_specs=pl.BlockSpec((TM, TC), o_map),
            compiler_params=compiler_params,
        )(x_c, w3, x_inv, sigma_arr)
        logits = out[:B, :C]
    else:
        tn_pref = 512 if (big_vmem and O >= 512) else 256
        TN = min(tn_pref, _round_up(O, 128))

        def est_plain(tn):
            return (tn * D * csize * 2 + TM * D * csize * 2
                    + TM * tn * osize * 2 + TM * tn * 4)

        while TN > 128 and est_plain(TN) > tile_budget:
            TN -= 128

        O_pad = _round_up(O, TN)
        grid_rows, grid_cols = B_pad // TM, O_pad // TN
        if grid_rows == 1 and grid_cols == 1 and TN % 256 == 0:   # feed both v7x TCs
            TN //= 2
            grid_cols = O_pad // TN

        w_t = wn.T                                   # (D, O): one-time transpose, no vxpose
        if O_pad != O:
            w_t = jnp.pad(w_t, ((0, 0), (0, O_pad - O)))

        x_scale = sigma_val * x_inv                  # fold sigma into the per-row scale

        x_resident = grid_rows * O_pad <= grid_cols * B_pad
        if x_resident:
            grid = (grid_rows, grid_cols)
            x_map = lambda i, j: (i, 0)
            s_map = lambda i, j: (i, 0)
            w_map = lambda i, j: (0, j)
            o_map = lambda i, j: (i, j)
        else:
            grid = (grid_cols, grid_rows)
            x_map = lambda j, i: (i, 0)
            s_map = lambda j, i: (i, 0)
            w_map = lambda j, i: (0, j)
            o_map = lambda j, i: (i, j)

        out = pl.pallas_call(
            _cosine_linear_kernel,
            out_shape=jax.ShapeDtypeStruct((B_pad, O_pad), out_dtype),
            grid=grid,
            in_specs=[
                pl.BlockSpec((TM, D), x_map),
                pl.BlockSpec((D, TN), w_map),
                pl.BlockSpec((TM, 1), s_map),
            ],
            out_specs=pl.BlockSpec((TM, TN), o_map),
            compiler_params=compiler_params,
        )(x_c, w_t, x_scale)
        logits = out[:B, :O]

    return {"logits": logits}


# --------------------------------------------------------------------------------------
# Pure-JAX reference (mirrors the torch module)
# --------------------------------------------------------------------------------------
def _ref_forward(x, weight, sigma=None, nb_proxy=1, to_reduce=False):
    def normalize(a):
        n = jnp.maximum(jnp.sqrt(jnp.sum(a * a, axis=1, keepdims=True)), _EPS)
        return a / n

    out = normalize(x) @ normalize(weight).T
    if to_reduce and nb_proxy > 1:
        bsz, oo = out.shape
        c = oo // nb_proxy
        s = out.reshape(bsz, c, nb_proxy)
        att = jax.nn.softmax(s, axis=-1)
        out = jnp.sum(att * s, axis=-1)
    if sigma is not None:
        out = sigma * out
    return {"logits": out}


if __name__ == "__main__":
    key = jax.random.PRNGKey(0)

    def make_inputs(k, B, D, out_features, nb_proxy):
        kx, kw = jax.random.split(k)
        stdv = 1.0 / (D ** 0.5)   # reset_parameters(): U(-stdv, stdv), sigma = 1
        w = jax.random.uniform(kw, (out_features * nb_proxy, D),
                               minval=-stdv, maxval=stdv, dtype=jnp.float32)
        x = jax.random.normal(kx, (B, D), dtype=jnp.float32)
        return x, w

    k1, k2, k3, k4 = jax.random.split(key, 4)

    # Case 1: module defaults (nb_proxy=1, no reduce), f32 MXU path, exact-ish check.
    x1, w1 = make_inputs(k1, B=8, D=32, out_features=8, nb_proxy=1)
    out1 = cosine_linear_forward(x1, w1, sigma=1.0, nb_proxy=1, to_reduce=False,
                                 compute_dtype=jnp.float32)
    jax.block_until_ready(out1["logits"])
    ref1 = _ref_forward(x1, w1, sigma=1.0, nb_proxy=1, to_reduce=False)
    assert out1["logits"].shape == ref1["logits"].shape
    assert jnp.allclose(out1["logits"], ref1["logits"], atol=1e-4), "case1 mismatch"

    # Case 2: fused proxy reduction (nb_proxy=2, to_reduce=True), f32 path (exact divide).
    x2, w2 = make_inputs(k2, B=8, D=32, out_features=8, nb_proxy=2)
    out2 = cosine_linear_forward(x2, w2, sigma=1.0, nb_proxy=2, to_reduce=True,
                                 compute_dtype=jnp.float32)
    jax.block_until_ready(out2["logits"])
    ref2 = _ref_forward(x2, w2, sigma=1.0, nb_proxy=2, to_reduce=True)
    assert out2["logits"].shape == ref2["logits"].shape
    assert jnp.allclose(out2["logits"], ref2["logits"], atol=1e-4), "case2 mismatch"

    # Case 3: multi-tile grid, padding-minimizing TM (=136 for B=272), bf16 MXU operands.
    x3, w3 = make_inputs(k3, B=272, D=96, out_features=300, nb_proxy=1)
    out3 = cosine_linear_forward(x3, w3, sigma=0.7, nb_proxy=1, to_reduce=False,
                                 compute_dtype=jnp.bfloat16)
    jax.block_until_ready(out3["logits"])
    ref3 = _ref_forward(x3, w3, sigma=0.7, nb_proxy=1, to_reduce=False)
    assert out3["logits"].shape == ref3["logits"].shape
    assert jnp.allclose(out3["logits"], ref3["logits"], atol=4e-2), "case3 mismatch"

    # Case 4: multi-tile grid + fused proxy reduction, bf16 operands, approx reciprocal.
    x4, w4 = make_inputs(k4, B=272, D=96, out_features=300, nb_proxy=2)
    out4 = cosine_linear_forward(x4, w4, sigma=0.7, nb_proxy=2, to_reduce=True,
                                 compute_dtype=jnp.bfloat16)
    jax.block_until_ready(out4["logits"])
    ref4 = _ref_forward(x4, w4, sigma=0.7, nb_proxy=2, to_reduce=True)
    assert out4["logits"].shape == ref4["logits"].shape
    assert jnp.allclose(out4["logits"], ref4["logits"], atol=4e-2), "case4 mismatch"

    print("KERNEL_OK")
</pallas_src>

<mosaic_0001>
module attributes {stable_mosaic.version = 11 : i64} {
  func.func @_cosine_linear_kernel(%arg0: i32, %arg1: i32, %arg2: memref<8x32xf32, #tpu.memory_space<vmem>>, %arg3: memref<32x128xf32, #tpu.memory_space<vmem>>, %arg4: memref<8x1xf32, #tpu.memory_space<vmem>>, %arg5: memref<8x128xf32, #tpu.memory_space<vmem>>) attributes {dimension_semantics = [#tpu.dimension_semantics<parallel>, #tpu.dimension_semantics<parallel>], iteration_bounds = array<i64: 1, 1>, scalar_prefetch = 0 : i64, scratch_operands = 0 : i64, tpu.core_type = #tpu.core_type<tc>, window_params = [{transform_indices = @transform_0, window_bounds = array<i64: 8, 32>}, {transform_indices = @transform_1, window_bounds = array<i64: 32, 128>}, {transform_indices = @transform_2, window_bounds = array<i64: 8, 1>}, {transform_indices = @transform_3, window_bounds = array<i64: 8, 128>}]} {
    %c0 = arith.constant 0 : index
    %c0_0 = arith.constant 0 : index
    %0 = vector.load %arg2[%c0, %c0_0] : memref<8x32xf32, #tpu.memory_space<vmem>>, vector<8x32xf32>
    %c0_1 = arith.constant 0 : index
    %c0_2 = arith.constant 0 : index
    %1 = vector.load %arg3[%c0_1, %c0_2] : memref<32x128xf32, #tpu.memory_space<vmem>>, vector<32x128xf32>
    %cst = arith.constant dense<0.000000e+00> : vector<8x128xf32>
    %2 = tpu.matmul %0, %1, %cst {dimension_numbers = #tpu.dot_dimension_numbers<[1], [0], [0], [1], [0, 0, 1, 1], [], []>} : vector<8x32xf32>, vector<32x128xf32>, vector<8x128xf32> -> vector<8x128xf32>
    %c0_3 = arith.constant 0 : index
    %c0_4 = arith.constant 0 : index
    %3 = vector.load %arg4[%c0_3, %c0_4] : memref<8x1xf32, #tpu.memory_space<vmem>>, vector<8x1xf32>
    %4 = vector.broadcast %3 : vector<8x1xf32> to vector<8x128xf32>
    %5 = arith.mulf %4, %2 : vector<8x128xf32>
    %c0_5 = arith.constant 0 : index
    %c0_6 = arith.constant 0 : index
    %6 = vector.load %arg5[%c0_5, %c0_6] : memref<8x128xf32, #tpu.memory_space<vmem>>, vector<8x128xf32>
    tpu.vector_store %arg5[%c0_5, %c0_6], %5 {strides = array<i32>} : memref<8x128xf32, #tpu.memory_space<vmem>>, vector<8x128xf32>,
    return
  }
  func.func @transform_0(%arg0: i32, %arg1: i32) -> (i32, i32) {
    %c0_i32 = arith.constant 0 : i32
    %c0_i32_0 = arith.constant 0 : i32
    return %arg1, %c0_i32 : i32, i32
  }
  func.func @transform_1(%arg0: i32, %arg1: i32) -> (i32, i32) {
    %c0_i32 = arith.constant 0 : i32
    %c0_i32_0 = arith.constant 0 : i32
    return %c0_i32, %arg0 : i32, i32
  }
  func.func @transform_2(%arg0: i32, %arg1: i32) -> (i32, i32) {
    %c0_i32 = arith.constant 0 : i32
    %c0_i32_0 = arith.constant 0 : i32
    return %arg1, %c0_i32 : i32, i32
  }
  func.func @transform_3(%arg0: i32, %arg1: i32) -> (i32, i32) {
    %c0_i32 = arith.constant 0 : i32
    return %arg1, %arg0 : i32, i32
  }
}

</mosaic_0001>

<bundles_post_ra>
// kernel: tpu_custom_call.1
= control target key start
LH: loop header
LB: loop body
LE: loop exit
PB: predicated region body
PF: predicated region fallthrough
CT: control target
= control target key end

     0   :  { %8 = vsyncpa [#allocation3], 0  ;;  %s181_s0 = inlined_call_operand.vmem [shape: f32[8,32], index: 0, kind: input, shape index: {}]   ;;  %s182_s1 = inlined_call_operand.hbm [shape: f32[32,128], index: 1, kind: input, shape index: {}]   ;;  %s183_s2 = inlined_call_operand.vmem [shape: f32[8,1], index: 2, kind: input, shape index: {}]   ;;  %s184_s3 = inlined_call_operand.hbm [shape: f32[8,128], index: 3, kind: output, shape index: {}]  }
   0x1   :  { %9 = vsyncpa [#allocation4], 0  ;;  %s16_s14 = sshll.u32 %s182_s1, 4  ;;  %s144_s15 = smov [#allocation2]   ;;  %s17_s14 = int_to_ptr.hbm [resolvable:$true] %s16_s14 }
   0x2   :  { %s18_s16 = sshll.u32 %s144_s15, 4  ;;  %s145_s17 = smov 128   ;;  %s19_s16 = int_to_ptr.vmem [resolvable:$true] %s18_s16 }
   0x3   :  { %s146_s18 = smov 8  }
   0x4   :  { %24 = dma.hbm_to_vmem [thread:$0]  %s17_s14, 512, %s19_s16, [#allocation3], %s145_s17, %s145_s17, %s146_s18  }
   0x5   :  { %140 = dma.done.wait [#allocation3], 512  }
   0x6   :  { %141 = vsyncadd [#allocation3], 4294966784  ;;  %v147_v0 = vmov 0   ;;  %v35_v1 = vld [vmem:[#allocation2 + $0x18] sm:$0xff]  ;;  %v34_v2 = vld [vmem:[#allocation2 + $0x10] sm:$0xff]  ;;  %vm36_vm0 = vcmask 261120  }
   0x7   :  { %91 = vset.pattern.permute.xlu0 %v147_v0  ;;  %52 = vmatpush.msra.mxu0 %v35_v1  ;;  %v60_v3 = vld [vmem:[%s183_s2] sm:$0xff]  ;;  %v33_v4 = vld [vmem:[#allocation2 + $0x8] sm:$0xff]  ;;  %s148_s22 = smov [#allocation5]   ;;  %s75_s26 = sshll.u32 %s184_s3, 4  ;;  %s76_s26 = int_to_ptr.hbm [resolvable:$true] %s75_s26 }
   0x8   :  { %63 = vperm.xlu0 %91, %v60_v3   ;;  %v32_v5 = vld [vmem:[#allocation2] sm:$0xff]  ;;  %s73_s23 = sshll.u32 %s148_s22, 4  ;;  %s74_s23 = int_to_ptr.vmem [resolvable:$true] %s73_s23 }
   0x9   :  { %53 = vmatpush.msra.mxu0 %v34_v2  ;;  %v31_v6 = vld [vmem:[%s181_s0] sm:$0xff] }
   0xb   :  { %54 = vmatpush.msra.mxu0 %v33_v4 }
   0xd   :  { %55 = vmatpush.msra.mxu0 %v32_v5 }
   0xe   :  { %85 = vmatmul.msk.f32.vlgmr.msra.gmra.mxu0 %vm36_vm0, %v31_v6 }
  0x7a   :  { %v64_v7 = vpop.permute.xlu0 %63 }
  0x8b   :  { %v57_v8 = vpop.f32.mrf.mxu0 }
  0x8c   :  { %v66_v9 = vmul.f32 %v64_v7, %v57_v8 }
  0x8e   :  { %67 = vst [vmem:[#allocation5] sm:$0xff] %v66_v9 }
  0x8f   :  { %78 = dma.vmem_to_hbm [thread:$0]  %s74_s23, 128, %s76_s26, [#allocation4]  }
  0x90   :  { %142 = dma.done.wait [#allocation4], 128  }
  0x91   :  { %143 = vsyncadd [#allocation4], 4294967168 }
  0x92   :  { %83 = vsyncpa [#allocation3], 1 }
  0x93   :  { %84 = vsyncpa [#allocation4], 1 }

</bundles_post_ra>
